<compile_context>
chip_gen: v7x
topology: tpu7x:2x2x1
jax: 0.10.0
libtpu: 0.0.40
codegen_flags: <defaults>
</compile_context>

<pallas_src>
import jax
import jax.numpy as jnp
from jax import lax
from jax.experimental import pallas as pl
from jax.experimental.pallas import tpu as pltpu


def _vmem_limit_bytes():
    """Scoped-VMEM limit sized from the chip: 48 MiB on v7x, 64 MiB on v5e/v6e."""
    cap = 64 << 20  # conservative fallback (treat as v7x-sized physical VMEM)
    try:
        cap = int(pltpu.get_tpu_info().vmem_capacity_bytes)
    except Exception:
        pass
    return min(64 << 20, (cap * 3) // 4)


def _pick_col_tile(n, budget_bytes):
    """Largest 128-multiple divisor of n whose score temporaries fit the budget.

    Prefers >= 2 column tiles so the column axis can shard across both
    TensorCores on v7x even when the batch is tiny.
    """
    if n % 128 != 0:
        return n  # tiny / irregular spatial extent: single full-width tile
    cands = [k * 128 for k in range(n // 128, 0, -1) if n % (k * 128) == 0]
    multi = [c for c in cands if c < n]
    if multi:
        cands = multi
    for c in cands:
        if 3 * n * c * 4 <= budget_bytes:  # ~scores + e (+ bf16 copy) in f32 bytes
            return c
    return cands[-1]


def attention_pallas(x_nchw, params, *, col_tile=None, matmul_dtype=jnp.bfloat16):
    """x_nchw: (B, C, W, H) float32.  params: dict of weights/biases."""
    B, C, W, H = x_nchw.shape
    N = W * H
    x = x_nchw.reshape(B, C, N)

    vmem_limit = _vmem_limit_bytes()
    TN = col_tile if col_tile is not None else _pick_col_tile(N, vmem_limit // 2)
    assert N % TN == 0, (N, TN)

    wf, bf = params["wf"], params["bf"]
    wg, bg = params["wg"], params["bg"]
    wh, bh = params["wh"], params["bh"]
    wv, bv = params["wv"], params["bv"]

    # Fuse the f and h projections (both need the full spatial extent) into one
    # stacked matmul; g is applied per column tile; v stays separate.
    w_fh = jnp.concatenate([wf, wh], axis=0)                    # (2C, C)
    b_fh = jnp.concatenate([bf, bh], axis=0).reshape(2 * C, 1)  # (2C, 1)
    b_g = bg.reshape(C, 1)
    b_v = bv.reshape(C, 1)

    def kernel(xf_ref, xt_ref, wfh_ref, bfh_ref, wg_ref, bg_ref, wv_ref, bv_ref,
               o_ref):
        x_full = xf_ref[0]                                  # (C, N)   f32, resident across j
        x_tile = xt_ref[0]                                  # (C, TN)  f32, this column tile

        # Fused 1x1 convs for f and h over the full spatial extent.
        fh = jnp.dot(wfh_ref[...], x_full,
                     preferred_element_type=jnp.float32) + bfh_ref[...]        # (2C, N)
        f = fh[:C].astype(matmul_dtype)                     # (C, N)
        h = fh[C:].astype(matmul_dtype)                     # (C, N)

        # g projection only on this column tile.
        g = jnp.dot(wg_ref[...], x_tile,
                    preferred_element_type=jnp.float32) + bg_ref[...]          # (C, TN)

        # scores[i, t] = sum_c f[c, i] * g[c, t]  -- contract the channel axis
        # directly (no transpose of f), bf16 inputs / f32 accumulation.
        scores = lax.dot_general(
            f, g.astype(matmul_dtype),
            dimension_numbers=(((0,), (0,)), ((), ())),
            preferred_element_type=jnp.float32)             # (N, TN)

        # Softmax over axis 0 (== torch Softmax(dim=1) on (B, N, N)).  Columns
        # are independent, so column tiling needs no online-softmax machinery.
        # Keep reductions / exp in f32 (v5e has no bf16 VPU/EUP; l stays f32).
        m = jnp.max(scores, axis=0, keepdims=True)          # (1, TN)
        e = jnp.exp(scores - m)                             # (N, TN) f32
        l = jnp.sum(e, axis=0, keepdims=True)               # (1, TN) f32

        # Deferred normalization: fgh_unnorm = h @ e, then scale the (C, TN)
        # result by 1/l via the EUP approx reciprocal (free slot) instead of
        # dividing the whole (N, TN) tile.
        fgh = jnp.dot(h, e.astype(matmul_dtype),
                      preferred_element_type=jnp.float32)   # (C, TN)
        fgh = fgh * pl.reciprocal(l, approx=True)

        # Final 1x1 conv v.
        out = jnp.dot(wv_ref[...], fgh,
                      preferred_element_type=jnp.float32) + bv_ref[...]        # (C, TN)
        o_ref[0] = out.astype(o_ref.dtype)

    out = pl.pallas_call(
        kernel,
        out_shape=jax.ShapeDtypeStruct((B, C, N), x.dtype),
        grid_spec=pltpu.PrefetchScalarGridSpec(
            num_scalar_prefetch=0,
            grid=(B, N // TN),
            in_specs=[
                pl.BlockSpec((1, C, N), lambda b, j: (b, 0, 0)),    # x, full N (resident over j)
                pl.BlockSpec((1, C, TN), lambda b, j: (b, 0, j)),   # x, column tile
                pl.BlockSpec((2 * C, C), lambda b, j: (0, 0)),      # stacked [wf; wh]
                pl.BlockSpec((2 * C, 1), lambda b, j: (0, 0)),      # stacked [bf; bh]
                pl.BlockSpec((C, C), lambda b, j: (0, 0)),          # wg
                pl.BlockSpec((C, 1), lambda b, j: (0, 0)),          # bg
                pl.BlockSpec((C, C), lambda b, j: (0, 0)),          # wv
                pl.BlockSpec((C, 1), lambda b, j: (0, 0)),          # bv
            ],
            out_specs=pl.BlockSpec((1, C, TN), lambda b, j: (b, 0, j)),
        ),
        compiler_params=pltpu.CompilerParams(
            dimension_semantics=("parallel", "parallel"),
            vmem_limit_bytes=vmem_limit),
    )(x, x, w_fh, b_fh, wg, b_g, wv, b_v)

    return out.reshape(B, C, W, H)


def attention_ref(x_nchw, params):
    """Pure-JAX f32 reference mirroring the torch forward exactly."""
    B, C, W, H = x_nchw.shape
    N = W * H
    x = x_nchw.reshape(B, C, N)

    def conv1x1(w, b, t):
        return jnp.einsum("oc,bcn->bon", w, t) + b.reshape(1, C, 1)

    f = jnp.transpose(conv1x1(params["wf"], params["bf"], x), (0, 2, 1))  # (B, N, C)
    g = conv1x1(params["wg"], params["bg"], x)                            # (B, C, N)
    fg = jnp.einsum("bnc,bcm->bnm", f, g)                                 # (B, N, N)
    attn = jax.nn.softmax(fg, axis=1)                                     # dim=1 !
    h = conv1x1(params["wh"], params["bh"], x)                            # (B, C, N)
    fgh = jnp.einsum("bcn,bnm->bcm", h, attn)                             # (B, C, N)
    out = conv1x1(params["wv"], params["bv"], fgh)
    return out.reshape(B, C, W, H)


def init_params(key, C):
    ks = jax.random.split(key, 8)
    scale = 1.0 / jnp.sqrt(C)
    def w(k): return jax.random.uniform(k, (C, C), jnp.float32, -scale, scale)
    def b(k): return jax.random.uniform(k, (C,), jnp.float32, -scale, scale)
    return {
        "wf": w(ks[0]), "bf": b(ks[1]),
        "wg": w(ks[2]), "bg": b(ks[3]),
        "wh": w(ks[4]), "bh": b(ks[5]),
        "wv": w(ks[6]), "bv": b(ks[7]),
        # gamma exists in the torch module but is unused in forward()
        "gamma": jnp.float32(0.0),
    }


if __name__ == "__main__":
    B, C, W, H = 2, 4, 16, 16
    key = jax.random.PRNGKey(0)
    kx, kp = jax.random.split(key)
    x = jax.random.normal(kx, (B, C, W, H), jnp.float32)
    params = init_params(kp, C)

    ref = attention_ref(x, params)

    # Default path: bf16 matmul inputs, f32 accumulation (column-tiled grid).
    out = attention_pallas(x, params)
    out = jax.block_until_ready(out)
    assert out.shape == (B, C, W, H)
    err_bf16 = float(jnp.max(jnp.abs(out - ref)))
    assert jnp.allclose(out, ref, atol=2e-2, rtol=2e-2), err_bf16

    # Tight check of the same structure with full-f32 matmul inputs.
    out_f32 = attention_pallas(x, params, matmul_dtype=jnp.float32)
    out_f32 = jax.block_until_ready(out_f32)
    err_f32 = float(jnp.max(jnp.abs(out_f32 - ref)))
    assert jnp.allclose(out_f32, ref, atol=5e-3, rtol=5e-3), err_f32

    print("KERNEL_OK")
</pallas_src>

<mosaic_0001>
module attributes {stable_mosaic.version = 11 : i64} {
  func.func @kernel(%arg0: i32, %arg1: i32, %arg2: memref<1x4x256xf32, #tpu.memory_space<vmem>>, %arg3: memref<1x4x128xf32, #tpu.memory_space<vmem>>, %arg4: memref<8x4xf32, #tpu.memory_space<vmem>>, %arg5: memref<8x1xf32, #tpu.memory_space<vmem>>, %arg6: memref<4x4xf32, #tpu.memory_space<vmem>>, %arg7: memref<4x1xf32, #tpu.memory_space<vmem>>, %arg8: memref<4x4xf32, #tpu.memory_space<vmem>>, %arg9: memref<4x1xf32, #tpu.memory_space<vmem>>, %arg10: memref<1x4x128xf32, #tpu.memory_space<vmem>>) attributes {dimension_semantics = [#tpu.dimension_semantics<parallel>, #tpu.dimension_semantics<parallel>], iteration_bounds = array<i64: 2, 2>, scalar_prefetch = 0 : i64, scratch_operands = 0 : i64, tpu.core_type = #tpu.core_type<tc>, window_params = [{transform_indices = @transform_0, window_bounds = array<i64: 1, 4, 256>}, {transform_indices = @transform_1, window_bounds = array<i64: 1, 4, 128>}, {pipeline_mode = #tpu.pipeline_mode<synchronous>, transform_indices = @transform_2, window_bounds = array<i64: 8, 4>}, {pipeline_mode = #tpu.pipeline_mode<synchronous>, transform_indices = @transform_3, window_bounds = array<i64: 8, 1>}, {pipeline_mode = #tpu.pipeline_mode<synchronous>, transform_indices = @transform_4, window_bounds = array<i64: 4, 4>}, {pipeline_mode = #tpu.pipeline_mode<synchronous>, transform_indices = @transform_5, window_bounds = array<i64: 4, 1>}, {pipeline_mode = #tpu.pipeline_mode<synchronous>, transform_indices = @transform_6, window_bounds = array<i64: 4, 4>}, {pipeline_mode = #tpu.pipeline_mode<synchronous>, transform_indices = @transform_7, window_bounds = array<i64: 4, 1>}, {transform_indices = @transform_8, window_bounds = array<i64: 1, 4, 128>}]} {
    %c0 = arith.constant 0 : index
    %c0_0 = arith.constant 0 : index
    %c0_1 = arith.constant 0 : index
    %0 = vector.load %arg2[%c0, %c0_0, %c0_1] : memref<1x4x256xf32, #tpu.memory_space<vmem>>, vector<1x4x256xf32>
    %1 = vector.shape_cast %0 : vector<1x4x256xf32> to vector<4x256xf32>
    %c0_2 = arith.constant 0 : index
    %c0_3 = arith.constant 0 : index
    %c0_4 = arith.constant 0 : index
    %2 = vector.load %arg3[%c0_2, %c0_3, %c0_4] : memref<1x4x128xf32, #tpu.memory_space<vmem>>, vector<1x4x128xf32>
    %3 = vector.shape_cast %2 : vector<1x4x128xf32> to vector<4x128xf32>
    %c0_5 = arith.constant 0 : index
    %c0_6 = arith.constant 0 : index
    %4 = vector.load %arg4[%c0_5, %c0_6] : memref<8x4xf32, #tpu.memory_space<vmem>>, vector<8x4xf32>
    %cst = arith.constant dense<0.000000e+00> : vector<8x256xf32>
    %5 = tpu.matmul %4, %1, %cst {dimension_numbers = #tpu.dot_dimension_numbers<[1], [0], [0], [1], [0, 0, 1, 1], [], []>} : vector<8x4xf32>, vector<4x256xf32>, vector<8x256xf32> -> vector<8x256xf32>
    %c0_7 = arith.constant 0 : index
    %c0_8 = arith.constant 0 : index
    %6 = vector.load %arg5[%c0_7, %c0_8] : memref<8x1xf32, #tpu.memory_space<vmem>>, vector<8x1xf32>
    %7 = vector.broadcast %6 : vector<8x1xf32> to vector<8x256xf32>
    %8 = arith.addf %5, %7 : vector<8x256xf32>
    %9 = vector.extract_strided_slice %8 {offsets = [0, 0], sizes = [4, 256], strides = [1, 1]} : vector<8x256xf32> to vector<4x256xf32>
    %10 = arith.truncf %9 : vector<4x256xf32> to vector<4x256xbf16>
    %11 = vector.extract_strided_slice %8 {offsets = [4, 0], sizes = [4, 256], strides = [1, 1]} : vector<8x256xf32> to vector<4x256xf32>
    %12 = arith.truncf %11 : vector<4x256xf32> to vector<4x256xbf16>
    %c0_9 = arith.constant 0 : index
    %c0_10 = arith.constant 0 : index
    %13 = vector.load %arg6[%c0_9, %c0_10] : memref<4x4xf32, #tpu.memory_space<vmem>>, vector<4x4xf32>
    %cst_11 = arith.constant dense<0.000000e+00> : vector<4x128xf32>
    %14 = tpu.matmul %13, %3, %cst_11 {dimension_numbers = #tpu.dot_dimension_numbers<[1], [0], [0], [1], [0, 0, 1, 1], [], []>} : vector<4x4xf32>, vector<4x128xf32>, vector<4x128xf32> -> vector<4x128xf32>
    %c0_12 = arith.constant 0 : index
    %c0_13 = arith.constant 0 : index
    %15 = vector.load %arg7[%c0_12, %c0_13] : memref<4x1xf32, #tpu.memory_space<vmem>>, vector<4x1xf32>
    %16 = vector.broadcast %15 : vector<4x1xf32> to vector<4x128xf32>
    %17 = arith.addf %14, %16 : vector<4x128xf32>
    %18 = arith.truncf %17 : vector<4x128xf32> to vector<4x128xbf16>
    %cst_14 = arith.constant dense<0.000000e+00> : vector<256x128xf32>
    %19 = tpu.matmul %10, %18, %cst_14 {dimension_numbers = #tpu.dot_dimension_numbers<[0], [0], [1], [1], [0, 1, 1, 1], [], []>} : vector<4x256xbf16>, vector<4x128xbf16>, vector<256x128xf32> -> vector<256x128xf32>
    %cst_15 = arith.constant dense<0xFF800000> : vector<128xf32>
    %20 = vector.multi_reduction <maximumf>, %19, %cst_15 [0] : vector<256x128xf32> to vector<128xf32>
    %21 = vector.shape_cast %20 : vector<128xf32> to vector<1x128xf32>
    %22 = vector.broadcast %21 : vector<1x128xf32> to vector<256x128xf32>
    %23 = arith.subf %19, %22 : vector<256x128xf32>
    %24 = math.exp %23 : vector<256x128xf32>
    %cst_16 = arith.constant dense<0.000000e+00> : vector<128xf32>
    %25 = vector.multi_reduction <add>, %24, %cst_16 [0] : vector<256x128xf32> to vector<128xf32>
    %26 = vector.shape_cast %25 : vector<128xf32> to vector<1x128xf32>
    %27 = arith.truncf %24 : vector<256x128xf32> to vector<256x128xbf16>
    %cst_17 = arith.constant dense<0.000000e+00> : vector<4x128xf32>
    %28 = tpu.matmul %12, %27, %cst_17 {dimension_numbers = #tpu.dot_dimension_numbers<[1], [0], [0], [1], [0, 0, 1, 1], [], []>} : vector<4x256xbf16>, vector<256x128xbf16>, vector<4x128xf32> -> vector<4x128xf32>
    %29 = tpu.reciprocal %26 {approx = true} : vector<1x128xf32> -> vector<1x128xf32>
    %30 = vector.broadcast %29 : vector<1x128xf32> to vector<4x128xf32>
    %31 = arith.mulf %28, %30 : vector<4x128xf32>
    %c0_18 = arith.constant 0 : index
    %c0_19 = arith.constant 0 : index
    %32 = vector.load %arg8[%c0_18, %c0_19] : memref<4x4xf32, #tpu.memory_space<vmem>>, vector<4x4xf32>
    %cst_20 = arith.constant dense<0.000000e+00> : vector<4x128xf32>
    %33 = tpu.matmul %32, %31, %cst_20 {dimension_numbers = #tpu.dot_dimension_numbers<[1], [0], [0], [1], [0, 0, 1, 1], [], []>} : vector<4x4xf32>, vector<4x128xf32>, vector<4x128xf32> -> vector<4x128xf32>
    %c0_21 = arith.constant 0 : index
    %c0_22 = arith.constant 0 : index
    %34 = vector.load %arg9[%c0_21, %c0_22] : memref<4x1xf32, #tpu.memory_space<vmem>>, vector<4x1xf32>
    %35 = vector.broadcast %34 : vector<4x1xf32> to vector<4x128xf32>
    %36 = arith.addf %33, %35 : vector<4x128xf32>
    %c0_23 = arith.constant 0 : index
    %c0_24 = arith.constant 0 : index
    %c0_25 = arith.constant 0 : index
    %37 = vector.load %arg10[%c0_23, %c0_24, %c0_25] : memref<1x4x128xf32, #tpu.memory_space<vmem>>, vector<1x4x128xf32>
    %38 = vector.shape_cast %37 : vector<1x4x128xf32> to vector<4x128xf32>
    %39 = vector.shape_cast %36 : vector<4x128xf32> to vector<1x4x128xf32>
    tpu.vector_store %arg10[%c0_23, %c0_24, %c0_25], %39 {strides = array<i32>} : memref<1x4x128xf32, #tpu.memory_space<vmem>>, vector<1x4x128xf32>,
    return
  }
  func.func @transform_0(%arg0: i32, %arg1: i32) -> (i32, i32, i32) {
    %c0_i32 = arith.constant 0 : i32
    %c0_i32_0 = arith.constant 0 : i32
    %c0_i32_1 = arith.constant 0 : i32
    return %arg0, %c0_i32, %c0_i32_0 : i32, i32, i32
  }
  func.func @transform_1(%arg0: i32, %arg1: i32) -> (i32, i32, i32) {
    %c0_i32 = arith.constant 0 : i32
    %c0_i32_0 = arith.constant 0 : i32
    return %arg0, %c0_i32, %arg1 : i32, i32, i32
  }
  func.func @transform_2(%arg0: i32, %arg1: i32) -> (i32, i32) {
    %c0_i32 = arith.constant 0 : i32
    %c0_i32_0 = arith.constant 0 : i32
    %c0_i32_1 = arith.constant 0 : i32
    return %c0_i32, %c0_i32_0 : i32, i32
  }
  func.func @transform_3(%arg0: i32, %arg1: i32) -> (i32, i32) {
    %c0_i32 = arith.constant 0 : i32
    %c0_i32_0 = arith.constant 0 : i32
    %c0_i32_1 = arith.constant 0 : i32
    return %c0_i32, %c0_i32_0 : i32, i32
  }
  func.func @transform_4(%arg0: i32, %arg1: i32) -> (i32, i32) {
    %c0_i32 = arith.constant 0 : i32
    %c0_i32_0 = arith.constant 0 : i32
    %c0_i32_1 = arith.constant 0 : i32
    return %c0_i32, %c0_i32_0 : i32, i32
  }
  func.func @transform_5(%arg0: i32, %arg1: i32) -> (i32, i32) {
    %c0_i32 = arith.constant 0 : i32
    %c0_i32_0 = arith.constant 0 : i32
    %c0_i32_1 = arith.constant 0 : i32
    return %c0_i32, %c0_i32_0 : i32, i32
  }
  func.func @transform_6(%arg0: i32, %arg1: i32) -> (i32, i32) {
    %c0_i32 = arith.constant 0 : i32
    %c0_i32_0 = arith.constant 0 : i32
    %c0_i32_1 = arith.constant 0 : i32
    return %c0_i32, %c0_i32_0 : i32, i32
  }
  func.func @transform_7(%arg0: i32, %arg1: i32) -> (i32, i32) {
    %c0_i32 = arith.constant 0 : i32
    %c0_i32_0 = arith.constant 0 : i32
    %c0_i32_1 = arith.constant 0 : i32
    return %c0_i32, %c0_i32_0 : i32, i32
  }
  func.func @transform_8(%arg0: i32, %arg1: i32) -> (i32, i32, i32) {
    %c0_i32 = arith.constant 0 : i32
    %c0_i32_0 = arith.constant 0 : i32
    return %arg0, %c0_i32, %arg1 : i32, i32, i32
  }
}

</mosaic_0001>

<bundles_post_ra>
// kernel: tpu_custom_call.1
= control target key start
LH: loop header
LB: loop body
LE: loop exit
PB: predicated region body
PF: predicated region fallthrough
CT: control target
= control target key end

     0   :  { %s2082_s0 = inlined_call_operand.vmem [shape: f32[2,4,256], index: 0, kind: input, shape index: {}]   ;;  %s2083_s1 = inlined_call_operand.vmem [shape: f32[2,4,256], index: 1, kind: input, shape index: {}]   ;;  %s2084_s2 = inlined_call_operand.vmem [shape: f32[8,4], index: 2, kind: input, shape index: {}]   ;;  %s2085_s3 = inlined_call_operand.vmem [shape: f32[8,1], index: 3, kind: input, shape index: {}]   ;;  %s2086_s4 = inlined_call_operand.vmem [shape: f32[4,4], index: 4, kind: input, shape index: {}]   ;;  %s2087_s5 = inlined_call_operand.vmem [shape: f32[4,1], index: 5, kind: input, shape index: {}]   ;;  %s2088_s6 = inlined_call_operand.vmem [shape: f32[4,4], index: 6, kind: input, shape index: {}]   ;;  %s2089_s7 = inlined_call_operand.vmem [shape: f32[4,1], index: 7, kind: input, shape index: {}]   ;;  %s2090_s8 = inlined_call_operand.hbm [shape: f32[2,4,256], index: 8, kind: output, shape index: {}]  }
   0x1   :  { %2095 = sst [smem:[#allocation10_spill]] %s2085_s3 }
   0x2   :  { %13 = vsyncpa [#allocation3], 0 }
   0x3   :  { %15 = vsyncpa [#allocation3 + $0x1], 0  ;;  %s1610_s27 = smov 0   ;;  %s1612_s28 = smov 0  }
   0x4   :  { %s1614_s29 = smov 0   ;;  %s1616_s30 = smov 0  }
   0x5   :  { %s1618_s9 = smov 0   ;;  %s1620_s10 = smov 0  }
   0x6   :  { %s1622_s11 = smov 0   ;;  %s1624_s12 = smov 0  }
   0x7 LB: > { %2096 = sst [smem:[#allocation5_spill]] %s1551_s10  ;;  %s1196_s13 = sadd.s32 4294967295, %s1559_s12   ;;  %s1559_s12 = sphi %s1624_s12, %s21_s12   ;;  %s1555_s11 = sphi %s1622_s11, %s2108_s11   ;;  %s1551_s10 = sphi %s1620_s10, %s2107_s10   ;;  %s1547_s9 = sphi %s1618_s9, %s2106_s9   ;;  %s1543_s30 = sphi %s1616_s30, %s2105_s30   ;;  %s1539_s29 = sphi %s1614_s29, %s2111_s29   ;;  %s1535_s28 = sphi %s1612_s28, %s2110_s28   ;;  %s1531_s27 = sphi %s1610_s27, %s2109_s27  }
   0x8   : > { %2097 = sst [smem:[#allocation6_spill]] %s1555_s11  ;;  %s1197_s14 = sadd.s32 4294967294, %s1559_s12  }
   0x9   : > { %s30_s15 = sadd.s32 1, %s1551_s10  ;;  %s33_s16 = sadd.s32 1, %s1555_s11 }
   0xa   : > { %p31_p0 = scmp.ge.s32.totalorder %s30_s15, 2  ;;  %p232_p1 = scmp.ne.s32.totalorder %s1539_s29, %s1535_s28 }
   0xb   : > { %p233_p2 = scmp.eq.s32.totalorder %s1196_s13, 3  ;;  %p238_p5 = scmp.ne.s32.totalorder %s1535_s28, %s1531_s27 }
   0xc   : > { %s2113_s15 = smov (%p31_p0, %s30_s15), 0  ;;  %s2115_s16 = smov (!%p31_p0, %s33_s16), %s1555_s11 }
   0xd   : > { %2098 = sst [smem:[#allocation7_spill]] %s2113_s15  ;;  %s218_s17 = ssub.s32 %s1551_s10, %s2113_s15 }
   0xe   : > { %p1661_p3 = por %p233_p2, %p232_p1  ;;  %p35_p4 = scmp.ge.s32.totalorder %s2115_s16, 2 }
   0xf   : > { %p239_p6 = scmp.eq.s32.totalorder %s1197_s14, 3  ;;  %p1200_p7 = scmp.ge.s32.totalorder %s1559_s12, 1 }
  0x10   : > { %s2117_s16 = smov (%p35_p4, %s2115_s16), 0  ;;  %p294_p9 = scmp.lt.s32.totalorder %s1559_s12, 5 }
  0x11   : > { %2100 = sst [smem:[#allocation8_spill]] %s2117_s16  ;;  %p1670_p8 = por %p239_p6, %p238_p5 }
  0x12   : > { %s217_s20 = ssub.s32 %s1555_s11, %s2117_s16  ;;  %s222_s21 = sadd.s32 1, %s1539_s29 }
  0x13   : > { %s219_s22 = sor.u32 %s218_s17, %s217_s20  ;;  %p295_p10 = pnand %p1200_p7, %p294_p9 }
  0x14   : > { %p220_p11 = scmp.eq.s32.totalorder %s219_s22, 0  ;;  %p336_p12 = scmp.lt.s32.totalorder (!%p295_p10), %s1547_s9, 1  ;;  %v1561_v0 = vmov (!%p295_p10), 0.0   ;;  %v1562_v2 = vmov (!%p295_p10), 0   ;;  %v444_v3 = vld [vmem:[%s2087_s5] sm:$0xf] (!%p295_p10) }
  0x15   : > { %298 = sbr.rel (%p295_p10) target bundleno = 1167 (0x48f), region = 52  ;;  %p343_p13 = scmp.lt.s32.totalorder (!%p295_p10), %s1543_s30, 1  ;;  %434 = vmatprep.mubr.f32.mxu1 (!%p295_p10), %v1561_v0  ;;  %1397 = vset.pattern.permute.xlu0 (!%p295_p10), %v1562_v2  ;;  %vm365_vm0 = vcmask (!%p295_p10), 1043456   ;;  %v352_v6 = vld [vmem:[%s2084_s2] sm:$0xff] (!%p295_p10)  ;;  %vm361_vm1 = vcmask (!%p295_p10), 31744   ;;  %vm1563_vm2 = vmmov (!%p295_p10), 0  }
  0x16   : > { %s1679_s23 = scalar_select %p220_p11, %s1539_s29, %s222_s21  }
  0x17   : > { %s2103_s3 = sld [smem:[#allocation10_spill]] (!%p295_p10)  ;;  %v1007_v8 = vld [vmem:[%s2089_s7] sm:$0xf] (!%p295_p10)  ;;  %vm607_vm3 = vcmask (!%p295_p10), 1041408  }
  0x18   : > { %2102 = sst [smem:[#allocation9_spill]] %s1679_s23  ;;  %v443_v9 = vld [vmem:[%s2086_s4] sm:$0xf] (!%p295_p10) }
  0x1c   : > { %s337_s26 = scalar_select %p336_p12, %s1547_s9, 1 }
  0x1d   : > { %v353_v1 = vld [vmem:[%s2103_s3] sm:$0xff]  ;;  %s344_s13 = scalar_select %p343_p13, %s1543_s30, 1 }
  0x1e   : > { %356 = vperm.xlu0 %1397, %v353_v1   ;;  %s1234_s14 = sshll.u32 %s337_s26, 3  ;;  %s1204_s17 = sshll.u32 %s337_s26, 1 }
  0x1f   : > { %s340_s15 = scalar_lea.vmem %s2082_s0, %s1234_s14  ;;  %s346_s11 = sadd.s32 %s1204_s17, %s344_s13 }
  0x20   : > { %v350_v4 = vld [vmem:[%s340_s15] sm:$0xff]  ;;  %s1205_s24 = sshll.u32 %s346_s11, 2  ;;  %s333_s13 = sand.u32 1, %s1535_s28  }
  0x21   : > { %v360_v5 = vcombine.high %v350_v4, %v350_v4  ;;  %s348_s10 = scalar_lea.vmem %s2083_s1, %s1205_s24  ;;  %s1201_s14 = sshll.u32 %s333_s13, 2 }
  0x22   : > { %447 = vperm.xlu0 %1397, %v444_v3   ;;  %v351_v7 = vld [vmem:[%s348_s10] sm:$0xf]  ;;  %s1230_s17 = sshll.u32 %s1547_s9, 1  ;;  %s335_s22 = scalar_lea.vmem [#allocation2], %s1201_s14 }
  0x23   : > { %1206 = vmatprep.subr.msk.mxu1 %vm365_vm0, %v360_v5  ;;  %s1102_s20 = sadd.s32 %s1543_s30, %s1230_s17  ;;  %s1106_s24 = sshll.u32 %s335_s22, 4  ;;  %s2031_s24 = int_to_ptr.vmem [resolvable:$true] %s1106_s24 }
  0x24   : > { %1207 = vmatpush1.msk.msra.mxu1 %vm365_vm0, %v350_v4  ;;  %s1231_s21 = sshll.u32 %s1102_s20, 6  ;;  %s1091_s9 = scalar_lea.sflag [#allocation3], %s333_s13 }
  0x25   : > { %1208 = vmatmul.mubr.msk.f32.vlgmr.msra.gmra.mrb[0].mxu1 %vm361_vm1, %v352_v6  ;;  %1278 = vmatprep.subr.mxu1 %v1561_v0  ;;  %s2029_s16 = scalar_lea.hbm %s2090_s8, %s1231_s21  ;;  %s1465_s30 = scalar_lea.vmem %s2031_s24, 64 }
  0x26   : > { %1279 = vmatpush3.msk.msra.mxu1 %vm365_vm0, %v351_v7  ;;  %1280 = vmatprep.mubr.msk.f32.mxu1 %vm1563_vm2, %v1561_v0  ;;  %p1466_p0 = scmp.ne.s32.totalorder %s2031_s24, %s1465_s30  ;;  %s1564_s15 = smov [#allocation2]  }
  0x27   : > { %1010 = vperm.xlu0 %1397, %v1007_v8   ;;  %s1469_s3 = sshll.u32 %s1564_s15, 4  ;;  %s1470_s3 = int_to_ptr.vmem [resolvable:$false] %s1469_s3 }
  0x28   : > { %p1467_p1 = pnand %p1466_p0, %p1661_p3  ;;  %s1471_s11 = scalar_lea.vmem %s1470_s3, 128 }
  0x29   : > { %1281 = vmatmul.mubr.msk.f32.vlgmr.msra.gmra.mrb[2].mxu1 %vm361_vm1, %v443_v9  ;;  %p1472_p4 = scmp.lt.s32.totalorder %s2031_s24, %s1470_s3  ;;  %p1473_p5 = scmp.lt.s32.totalorder %s1471_s11, %s1465_s30 }
  0x2a   : > { %p1468_p2 = pneg %p1467_p1 }
  0x2b   : > { %p1474_p6 = por %p1473_p5, %p1472_p4 }
  0x2d   : > { %p1475_p7 = pnand %p1474_p6, %p1468_p2 }
  0x9d   : > { %v357_v10 = vpop.permute.xlu0 %356 }
  0xa1   : > { %v448_v16 = vpop.permute.xlu0 %447 }
  0xf8   : > { %v436_v11 = vpop.f32.mrb[0].mxu1 }
  0xf9   : > { %v437_v12 = vadd.f32 %v436_v11, %v357_v10  ;;  %v438_v13 = vpop.f32.mrb[1].mxu1 }
  0xfa   : > { %v439_v14 = vadd.f32 %v438_v13, %v357_v10 }
  0xfb   : > { %v1715_v15 = vpack.c.bf16 %v437_v12, %v437_v12 }
  0xfc   : > { %v442_v17 = vpack.c.bf16 %v439_v14, %v439_v14  ;;  %v522_v18 = vpop.f32.mrb[2].mxu1 }
  0xfd   : > { %v523_v19 = vadd.f32 %v522_v18, %v448_v16  ;;  %527 = vxpose.xlu1.c.b16.start.end [1/1] (short) %v1715_v15, 128  ;;  %v1282_v20 = vpop.f32.mrb[3].mxu1 }
  0xfe   : > { %v961_v21 = vrot.slane %v442_v17, 2 }
  0xff   : > { %v526_v22 = vpack.c.bf16 %v523_v19, %v523_v19 }
 0x100   : > { %996 = vmatprep.mubr.bf16.mxu1 %v961_v21 }
 0x101   : > { %1322 = vmatprep.subr.msk.bf16.mxu0 %vm607_vm3, %v526_v22  ;;  %v609_v23 = vsel %vm607_vm3, %v526_v22, 0 }
 0x102   : > { %1284 = vmatpush3.bf16.msra.mxu0 %v609_v23 }
 0x11a   : > { %543 = vxpose.xlu1.c.b16.start.end [1/1] (short) %v442_v17, 128 }
 0x163   : > { %v535_v24 = vpop.trf.xlu1 }
 0x164   : > { %1285 = vmatprep.mubr.msk.bf16.mxu0 %vm361_vm1, %v535_v24 }
 0x167   : > { %v536_v25 = vpop.trf.xlu1 }
 0x168   : > { %1286 = vmatmul.mubr.msk.bf16.vlgmr.msra.gmra.mrb[0].mxu0 %vm361_vm1, %v536_v25 }
 0x16b   : > { %v537_v26 = vpop.trf.xlu1 }
 0x16c   : > { %1289 = vmatprep.mubr.msk.bf16.mxu0 %vm361_vm1, %v537_v26 }
 0x16f   : > { %v538_v27 = vpop.trf.xlu1 }
 0x170   : > { %1290 = vmatmul.mubr.msk.bf16.gmra.mrb[4].mxu0 %vm361_vm1, %v538_v27 }
 0x173   : > { %v539_v28 = vpop.trf.xlu1 }
 0x174   : > { %1293 = vmatprep.mubr.msk.bf16.mxu0 %vm361_vm1, %v539_v28 }
 0x177   : > { %v540_v29 = vpop.trf.xlu1 }
 0x178   : > { %1294 = vmatmul.mubr.msk.bf16.gmra.mrb[8].mxu0 %vm361_vm1, %v540_v29 }
 0x17b   : > { %v541_v30 = vpop.trf.xlu1 }
 0x17c   : > { %1297 = vmatprep.mubr.msk.bf16.mxu0 %vm361_vm1, %v541_v30 }
 0x17f   : > { %v542_v31 = vpop.trf.xlu1 }
 0x180   : > { %1298 = vmatmul.mubr.msk.bf16.gmra.mrb[12].mxu0 %vm361_vm1, %v542_v31 }
 0x183   : > { %v551_v32 = vpop.trf.xlu1 }
 0x184   : > { %1301 = vmatprep.mubr.msk.bf16.mxu0 %vm361_vm1, %v551_v32 }
 0x187   : > { %v552_v33 = vpop.trf.xlu1 }
 0x188   : > { %1302 = vmatmul.mubr.msk.bf16.gmra.mrb[16].mxu0 %vm361_vm1, %v552_v33 }
 0x18b   : > { %v553_v34 = vpop.trf.xlu1 }
 0x18c   : > { %1305 = vmatprep.mubr.msk.bf16.mxu0 %vm361_vm1, %v553_v34 }
 0x18f   : > { %v554_v35 = vpop.trf.xlu1 }
 0x190   : > { %1306 = vmatmul.mubr.msk.bf16.gmra.mrb[20].mxu0 %vm361_vm1, %v554_v35 }
 0x193   : > { %v555_v36 = vpop.trf.xlu1 }
 0x194   : > { %1309 = vmatprep.mubr.msk.bf16.mxu0 %vm361_vm1, %v555_v36 }
 0x197   : > { %v556_v37 = vpop.trf.xlu1 }
 0x198   : > { %1310 = vmatmul.mubr.msk.bf16.gmra.mrb[24].mxu0 %vm361_vm1, %v556_v37 }
 0x19b   : > { %v557_v38 = vpop.trf.xlu1 }
 0x19c   : > { %1313 = vmatprep.mubr.msk.bf16.mxu0 %vm361_vm1, %v557_v38 }
 0x19f   : > { %v558_v39 = vpop.trf.xlu1 }
 0x1a0   : > { %1314 = vmatmul.mubr.msk.bf16.gmra.mrb[28].mxu0 %vm361_vm1, %v558_v39 }
 0x23b   : > { %v1734_v40 = vpop.f32.mrb[0].mxu0 }
 0x23c   : > { %v1736_v41 = vpop.f32.mrb[1].mxu0 }
 0x23d   : > { %v1738_v42 = vpop.f32.mrb[2].mxu0 }
 0x23e   : > { %v1740_v43 = vpop.f32.mrb[3].mxu0 }
 0x243   : > { %v1742_v44 = vpop.f32.mrb[4].mxu0 }
 0x244   : > { %v774_v45 = vmax.f32 %v1734_v40, %v1742_v44  ;;  %v1746_v46 = vpop.f32.mrb[5].mxu0 }
 0x245   : > { %v772_v47 = vmax.f32 %v1736_v41, %v1746_v46  ;;  %v1750_v48 = vpop.f32.mrb[6].mxu0 }
 0x246   : > { %v775_v49 = vmax.f32 %v1738_v42, %v1750_v48  ;;  %v1754_v50 = vpop.f32.mrb[7].mxu0 }
 0x247   : > { %v773_v51 = vmax.f32 %v1740_v43, %v1754_v50 }
 0x24b   : > { %v1758_v52 = vpop.f32.mrb[8].mxu0 }
 0x24c   : > { %v778_v53 = vmax.f32 %v774_v45, %v1758_v52  ;;  %v1761_v54 = vpop.f32.mrb[9].mxu0 }
 0x24d   : > { %v776_v55 = vmax.f32 %v772_v47, %v1761_v54  ;;  %v1764_v56 = vpop.f32.mrb[10].mxu0 }
 0x24e   : > { %v779_v57 = vmax.f32 %v775_v49, %v1764_v56  ;;  %v1767_v58 = vpop.f32.mrb[11].mxu0 }
 0x24f   : > { %v777_v59 = vmax.f32 %v773_v51, %v1767_v58 }
 0x253   : > { %v1770_v60 = vpop.f32.mrb[12].mxu0 }
 0x254   : > { %v782_v61 = vmax.f32 %v778_v53, %v1770_v60  ;;  %v1773_v62 = vpop.f32.mrb[13].mxu0 }
 0x255   : > { %v780_v63 = vmax.f32 %v776_v55, %v1773_v62  ;;  %v1776_v1 = vpop.f32.mrb[14].mxu0 }
 0x256   : > { %v783_v2 = vmax.f32 %v779_v57, %v1776_v1  ;;  %v1779_v3 = vpop.f32.mrb[15].mxu0 }
 0x257   : > { %v781_v4 = vmax.f32 %v777_v59, %v1779_v3 }
 0x25b   : > { %v1782_v5 = vpop.f32.mrb[16].mxu0 }
 0x25c   : > { %v786_v6 = vmax.f32 %v782_v61, %v1782_v5  ;;  %v1785_v7 = vpop.f32.mrb[17].mxu0 }
 0x25d   : > { %v784_v8 = vmax.f32 %v780_v63, %v1785_v7  ;;  %v1788_v9 = vpop.f32.mrb[18].mxu0 }
 0x25e   : > { %v787_v10 = vmax.f32 %v783_v2, %v1788_v9  ;;  %v1791_v11 = vpop.f32.mrb[19].mxu0 }
 0x25f   : > { %v785_v12 = vmax.f32 %v781_v4, %v1791_v11 }
 0x263   : > { %v1794_v13 = vpop.f32.mrb[20].mxu0 }
 0x264   : > { %v790_v14 = vmax.f32 %v786_v6, %v1794_v13  ;;  %v1797_v16 = vpop.f32.mrb[21].mxu0 }
 0x265   : > { %v788_v17 = vmax.f32 %v784_v8, %v1797_v16  ;;  %v1800_v18 = vpop.f32.mrb[22].mxu0 }
 0x266   : > { %v791_v19 = vmax.f32 %v787_v10, %v1800_v18  ;;  %v1803_v20 = vpop.f32.mrb[23].mxu0 }
 0x267   : > { %v789_v21 = vmax.f32 %v785_v12, %v1803_v20 }
 0x26b   : > { %v1806_v22 = vpop.f32.mrb[24].mxu0 }
 0x26c   : > { %v794_v23 = vmax.f32 %v790_v14, %v1806_v22  ;;  %v1809_v24 = vpop.f32.mrb[25].mxu0 }
 0x26d   : > { %v792_v25 = vmax.f32 %v788_v17, %v1809_v24  ;;  %v1812_v26 = vpop.f32.mrb[26].mxu0 }
 0x26e   : > { %v795_v27 = vmax.f32 %v791_v19, %v1812_v26  ;;  %v1815_v28 = vpop.f32.mrb[27].mxu0 }
 0x26f   : > { %v793_v29 = vmax.f32 %v789_v21, %v1815_v28 }
 0x273   : > { %v1818_v30 = vpop.f32.mrb[28].mxu0 }
 0x274   : > { %v798_v31 = vmax.f32 %v794_v23, %v1818_v30  ;;  %v1821_v32 = vpop.f32.mrb[29].mxu0 }
 0x275   : > { %v796_v33 = vmax.f32 %v792_v25, %v1821_v32  ;;  %v1824_v34 = vpop.f32.mrb[30].mxu0 }
 0x276   : > { %v799_v35 = vmax.f32 %v795_v27, %v1824_v34  ;;  %v1827_v36 = vpop.f32.mrb[31].mxu0 }
 0x277   : > { %v797_v37 = vmax.f32 %v793_v29, %v1827_v36 }
 0x278   : > { %v801_v38 = vmax.f32 %v798_v31, %v799_v35 }
 0x279   : > { %v800_v39 = vmax.f32 %v796_v33, %v797_v37 }
 0x27b   : > { %v802_v45 = vmax.f32 %v800_v39, %v801_v38 }
 0x27d   : > { %v803_v47 = vrot.slane %v802_v45, 4 }
 0x27f   : > { %v804_v49 = vmax.f32 %v802_v45, %v803_v47 }
 0x281   : > { %v805_v51 = vrot.slane %v804_v49, 2 }
 0x283   : > { %v806_v53 = vmax.f32 %v804_v49, %v805_v51 }
 0x285   : > { %v807_v55 = vrot.slane %v806_v53, 1 }
 0x287   : > { %v1830_v57 = vmax.f32 %v806_v53, %v807_v55 }
 0x289   : > { %v809_v59 = vsub.f32 %v1736_v41, %v1830_v57  ;;  %v810_v61 = vsub.f32 %v1740_v43, %v1830_v57  ;;  %v811_v63 = vsub.f32 %v1734_v40, %v1830_v57  ;;  %v812_v2 = vsub.f32 %v1738_v42, %v1830_v57 }
 0x28a   : > { %v813_v4 = vsub.f32 %v1746_v46, %v1830_v57  ;;  %v814_v6 = vsub.f32 %v1754_v50, %v1830_v57  ;;  %v815_v8 = vsub.f32 %v1742_v44, %v1830_v57  ;;  %v816_v41 = vsub.f32 %v1750_v48, %v1830_v57 }
 0x28b   : > { %v817_v43 = vsub.f32 %v1761_v54, %v1830_v57  ;;  %v818_v40 = vsub.f32 %v1767_v58, %v1830_v57  ;;  %v819_v42 = vsub.f32 %v1758_v52, %v1830_v57  ;;  %v820_v46 = vsub.f32 %v1764_v56, %v1830_v57 }
 0x28c   : > { %v821_v50 = vsub.f32 %v1773_v62, %v1830_v57  ;;  %v822_v44 = vsub.f32 %v1779_v3, %v1830_v57  ;;  %v823_v48 = vsub.f32 %v1770_v60, %v1830_v57  ;;  %v824_v54 = vsub.f32 %v1776_v1, %v1830_v57 }
 0x28d   : > { %v825_v58 = vsub.f32 %v1785_v7, %v1830_v57  ;;  %v826_v52 = vsub.f32 %v1791_v11, %v1830_v57  ;;  %v827_v56 = vsub.f32 %v1782_v5, %v1830_v57  ;;  %v828_v62 = vsub.f32 %v1788_v9, %v1830_v57 }
 0x28e   : > { %v829_v3 = vsub.f32 %v1797_v16, %v1830_v57  ;;  %v830_v60 = vsub.f32 %v1803_v20, %v1830_v57  ;;  %v831_v1 = vsub.f32 %v1794_v13, %v1830_v57  ;;  %v832_v7 = vsub.f32 %v1800_v18, %v1830_v57 }
 0x28f   : > { %v833_v10 = vsub.f32 %v1809_v24, %v1830_v57  ;;  %v834_v5 = vsub.f32 %v1815_v28, %v1830_v57  ;;  %v835_v9 = vsub.f32 %v1806_v22, %v1830_v57  ;;  %v836_v11 = vsub.f32 %v1812_v26, %v1830_v57 }
 0x290   : > { %v837_v12 = vsub.f32 %v1821_v32, %v1830_v57  ;;  %v838_v14 = vsub.f32 %v1827_v36, %v1830_v57  ;;  %v839_v16 = vsub.f32 %v1818_v30, %v1830_v57  ;;  %v840_v17 = vsub.f32 %v1824_v34, %v1830_v57 }
 0x291   : > { %v841_v19 = vmul.f32 1.442695, %v809_v59  ;;  %v843_v21 = vmul.f32 1.442695, %v810_v61  ;;  %v845_v23 = vmul.f32 1.442695, %v811_v63 }
 0x292   : > { %v847_v25 = vmul.f32 1.442695, %v812_v2  ;;  %v849_v27 = vmul.f32 1.442695, %v813_v4  ;;  %v851_v29 = vmul.f32 1.442695, %v814_v6 }
 0x293   : > { %1399 = vpow2.f32 %v841_v19  ;;  %v853_v31 = vmul.f32 1.442695, %v815_v8  ;;  %v855_v33 = vmul.f32 1.442695, %v816_v41  ;;  %v857_v35 = vmul.f32 1.442695, %v817_v43 }
 0x294   : > { %1401 = vpow2.f32 %v843_v21  ;;  %v859_v37 = vmul.f32 1.442695, %v818_v40  ;;  %v861_v38 = vmul.f32 1.442695, %v819_v42  ;;  %v863_v39 = vmul.f32 1.442695, %v820_v46 }
 0x295   : > { %1403 = vpow2.f32 %v845_v23  ;;  %v865_v45 = vmul.f32 1.442695, %v821_v50  ;;  %v867_v47 = vmul.f32 1.442695, %v822_v44  ;;  %v869_v51 = vmul.f32 1.442695, %v823_v48 }
 0x296   : > { %1405 = vpow2.f32 %v847_v25  ;;  %v871_v55 = vmul.f32 1.442695, %v824_v54  ;;  %v873_v61 = vmul.f32 1.442695, %v825_v58  ;;  %v875_v6 = vmul.f32 1.442695, %v826_v52 }
 0x297   : > { %1407 = vpow2.f32 %v849_v27  ;;  %v877_v41 = vmul.f32 1.442695, %v827_v56  ;;  %v879_v46 = vmul.f32 1.442695, %v828_v62  ;;  %v881_v44 = vmul.f32 1.442695, %v829_v3 }
 0x298   : > { %1409 = vpow2.f32 %v851_v29  ;;  %v883_v52 = vmul.f32 1.442695, %v830_v60  ;;  %v885_v62 = vmul.f32 1.442695, %v831_v1  ;;  %v887_v20 = vmul.f32 1.442695, %v832_v7 }
 0x299   : > { %1411 = vpow2.f32 %v853_v31  ;;  %v889_v13 = vmul.f32 1.442695, %v833_v10  ;;  %v891_v18 = vmul.f32 1.442695, %v834_v5  ;;  %v893_v24 = vmul.f32 1.442695, %v835_v9 }
 0x29a   : > { %1413 = vpow2.f32 %v855_v33  ;;  %v895_v28 = vmul.f32 1.442695, %v836_v11  ;;  %v897_v22 = vmul.f32 1.442695, %v837_v12  ;;  %v899_v26 = vmul.f32 1.442695, %v838_v14 }
 0x29b   : > { %1415 = vpow2.f32 %v857_v35  ;;  %v901_v35 = vmul.f32 1.442695, %v839_v16 }
 0x29c   : > { %1417 = vpow2.f32 %v859_v37 }
 0x29d   : > { %v1896_v49 = vpop.eup %1399  ;;  %1419 = vpow2.f32 %v861_v38  ;;  %v903_v38 = vmul.f32 1.442695, %v840_v17 }
 0x29e   : > { %v1898_v53 = vpop.eup %1401  ;;  %1421 = vpow2.f32 %v863_v39 }
 0x29f   : > { %v1900_v59 = vpop.eup %1403  ;;  %1423 = vpow2.f32 %v865_v45  ;;  %v905_v63 = vadd.f32 %v1898_v53, %v1896_v49  ;;  %v942_v2 = vpack.c.bf16 %v1898_v53, %v1896_v49 }
 0x2a0   : > { %v1906_v4 = vpop.eup %1405  ;;  %1425 = vpow2.f32 %v867_v47 }
 0x2a1   : > { %v1908_v8 = vpop.eup %1407  ;;  %1427 = vpow2.f32 %v869_v51  ;;  %v906_v43 = vadd.f32 %v1900_v59, %v905_v63  ;;  %v943_v40 = vpack.c.bf16 %v1906_v4, %v1900_v59 }
 0x2a2   : > { %v1913_v42 = vpop.eup %1409  ;;  %1429 = vpow2.f32 %v871_v55 }
 0x2a3   : > { %v1915_v50 = vpop.eup %1411  ;;  %1431 = vpow2.f32 %v873_v61  ;;  %v907_v48 = vadd.f32 %v1906_v4, %v906_v43  ;;  %v944_v54 = vpack.c.bf16 %v1913_v42, %v1908_v8 }
 0x2a4   : > { %v1920_v58 = vpop.eup %1413  ;;  %1433 = vpow2.f32 %v875_v6 }
 0x2a5   : > { %v1925_v56 = vpop.eup %1415  ;;  %1435 = vpow2.f32 %v877_v41  ;;  %v908_v3 = vadd.f32 %v1908_v8, %v907_v48  ;;  %v945_v19 = vpack.c.bf16 %v1920_v58, %v1915_v50 }
 0x2a6   : > { %v1933_v21 = vpop.eup %1417  ;;  %1437 = vpow2.f32 %v879_v46 }
 0x2a7   : > { %v1938_v60 = vpop.eup %1419  ;;  %1439 = vpow2.f32 %v881_v44  ;;  %v909_v1 = vadd.f32 %v1913_v42, %v908_v3  ;;  %v946_v23 = vpack.c.bf16 %v1933_v21, %v1925_v56 }
 0x2a8   : > { %v1946_v25 = vpop.eup %1421  ;;  %1441 = vpow2.f32 %v883_v52 }
 0x2a9   : > { %v1951_v7 = vpop.eup %1423  ;;  %1443 = vpow2.f32 %v885_v62  ;;  %v910_v10 = vadd.f32 %v1915_v50, %v909_v1  ;;  %v947_v27 = vpack.c.bf16 %v1946_v25, %v1938_v60 }
 0x2aa   : > { %v1959_v29 = vpop.eup %1425  ;;  %1445 = vpow2.f32 %v887_v20 }
 0x2ab   : > { %v1964_v5 = vpop.eup %1427  ;;  %1447 = vpow2.f32 %v889_v13  ;;  %v911_v9 = vadd.f32 %v1920_v58, %v910_v10  ;;  %v948_v31 = vpack.c.bf16 %v1959_v29, %v1951_v7 }
 0x2ac   : > { %v1972_v33 = vpop.eup %1429  ;;  %1449 = vpow2.f32 %v891_v18 }
 0x2ad   : > { %v1432_v11 = vpop.eup %1431  ;;  %1451 = vpow2.f32 %v893_v24  ;;  %v912_v32 = vadd.f32 %v1925_v56, %v911_v9  ;;  %v949_v12 = vpack.c.bf16 %v1972_v33, %v1964_v5  ;;  %v960_v56 = vrot.slane %v1715_v15, 2 }
 0x2ae   : > { %v1434_v37 = vpop.eup %1433  ;;  %1453 = vpow2.f32 %v895_v28 }
 0x2af   : > { %v1436_v39 = vpop.eup %1435  ;;  %1455 = vpow2.f32 %v897_v22  ;;  %v913_v36 = vadd.f32 %v1933_v21, %v912_v32  ;;  %v950_v14 = vpack.c.bf16 %v1434_v37, %v1432_v11  ;;  %v1011_v32 = vpop.permute.xlu0 %1010 }
 0x2b0   : > { %v1438_v45 = vpop.eup %1437  ;;  %1457 = vpow2.f32 %v899_v26 }
 0x2b1   : > { %v1440_v30 = vpop.eup %1439  ;;  %1459 = vpow2.f32 %v901_v35  ;;  %v914_v16 = vadd.f32 %v1938_v60, %v913_v36  ;;  %1254 = vmatprep.subr.bf16.mxu1 %v950_v14  ;;  %v951_v47 = vpack.c.bf16 %v1438_v45, %v1436_v39  ;;  %v1006_v35 = vld [vmem:[%s2088_s6] sm:$0xf] }
 0x2b2   : > { %v1442_v51 = vpop.eup %1441  ;;  %1461 = vpow2.f32 %v903_v38  ;;  %1255 = vmatpush3.bf16.msra.mxu1 %v942_v2 }
 0x2b3   : > { %v1444_v34 = vpop.eup %1443  ;;  %v915_v57 = vadd.f32 %v1946_v25, %v914_v16  ;;  %1256 = vmatprep.subr.bf16.mxu1 %v951_v47  ;;  %v952_v17 = vpack.c.bf16 %v1442_v51, %v1440_v30 }
 0x2b4   : > { %v1446_v55 = vpop.eup %1445 }
 0x2b5   : > { %v1448_v61 = vpop.eup %1447  ;;  %v916_v63 = vadd.f32 %v1951_v7, %v915_v57  ;;  %v953_v6 = vpack.c.bf16 %v1446_v55, %v1444_v34 }
 0x2b6   : > { %v1450_v41 = vpop.eup %1449  ;;  %1257 = vmatpush3.bf16.msra.mxu1 %v943_v40 }
 0x2b7   : > { %v1452_v43 = vpop.eup %1451  ;;  %v917_v46 = vadd.f32 %v1959_v29, %v916_v63  ;;  %1258 = vmatprep.subr.bf16.mxu1 %v952_v17  ;;  %v954_v49 = vpack.c.bf16 %v1450_v41, %v1448_v61 }
 0x2b8   : > { %v1454_v53 = vpop.eup %1453 }
 0x2b9   : > { %v1456_v2 = vpop.eup %1455  ;;  %v918_v44 = vadd.f32 %v1964_v5, %v917_v46  ;;  %v955_v48 = vpack.c.bf16 %v1454_v53, %v1452_v43 }
 0x2ba   : > { %v1458_v52 = vpop.eup %1457  ;;  %1259 = vmatpush3.bf16.msra.mxu1 %v944_v54 }
 0x2bb   : > { %v1460_v62 = vpop.eup %1459  ;;  %v919_v3 = vadd.f32 %v1972_v33, %v918_v44  ;;  %1260 = vmatprep.subr.bf16.mxu1 %v953_v6  ;;  %v956_v59 = vpack.c.bf16 %v1458_v52, %v1456_v2 }
 0x2bc   : > { %v1462_v4 = vpop.eup %1461 }
 0x2bd   : > { %v920_v40 = vadd.f32 %v1432_v11, %v919_v3  ;;  %v957_v20 = vpack.c.bf16 %v1462_v4, %v1460_v62 }
 0x2be   : > { %1261 = vmatpush3.bf16.msra.mxu1 %v945_v19 }
 0x2bf   : > { %v921_v13 = vadd.f32 %v1434_v37, %v920_v40  ;;  %1262 = vmatprep.subr.bf16.mxu1 %v954_v49 }
 0x2c1   : > { %v922_v1 = vadd.f32 %v1436_v39, %v921_v13 }
 0x2c2   : > { %1263 = vmatpush3.bf16.msra.mxu1 %v946_v23 }
 0x2c3   : > { %v923_v8 = vadd.f32 %v1438_v45, %v922_v1  ;;  %1264 = vmatprep.subr.bf16.mxu1 %v955_v48 }
 0x2c5   : > { %v924_v42 = vadd.f32 %v1440_v30, %v923_v8 }
 0x2c6   : > { %1265 = vmatpush3.bf16.msra.mxu1 %v947_v27 }
 0x2c7   : > { %v925_v54 = vadd.f32 %v1442_v51, %v924_v42  ;;  %1266 = vmatprep.subr.bf16.mxu1 %v956_v59 }
 0x2c9   : > { %v926_v18 = vadd.f32 %v1444_v34, %v925_v54 }
 0x2ca   : > { %1267 = vmatpush3.bf16.msra.mxu1 %v948_v31 }
 0x2cb   : > { %v927_v50 = vadd.f32 %v1446_v55, %v926_v18  ;;  %1268 = vmatprep.subr.bf16.mxu1 %v957_v20 }
 0x2cd   : > { %v928_v58 = vadd.f32 %v1448_v61, %v927_v50 }
 0x2ce   : > { %1269 = vmatpush3.bf16.msra.mxu1 %v949_v12 }
 0x2cf   : > { %v929_v19 = vadd.f32 %v1450_v41, %v928_v58  ;;  %1317 = vmatprep.subr.mxu1 %v1561_v0 }
 0x2d1   : > { %v930_v21 = vadd.f32 %v1452_v43, %v929_v19  ;;  %997 = vmatmul.mubr.bf16.vlgmr.msra.gmra.mrb[4].mxu1 %v960_v56 }
 0x2d2   : > { %1319 = vmatprep.mubr.msk.f32.mxu1 %vm1563_vm2, %v1561_v0 }
 0x2d3   : > { %v931_v60 = vadd.f32 %v1454_v53, %v930_v21 }
 0x2d5   : > { %v932_v23 = vadd.f32 %v1456_v2, %v931_v60 }
 0x2d7   : > { %v933_v25 = vadd.f32 %v1458_v52, %v932_v23 }
 0x2d9   : > { %v934_v24 = vadd.f32 %v1460_v62, %v933_v25 }
 0x2db   : > { %v935_v7 = vadd.f32 %v1462_v4, %v934_v24 }
 0x2dd   : > { %v936_v10 = vrot.slane %v935_v7, 4 }
 0x2df   : > { %v937_v27 = vadd.f32 %v936_v10, %v935_v7 }
 0x2e1   : > { %v938_v29 = vrot.slane %v937_v27, 2 }
 0x2e3   : > { %v939_v28 = vadd.f32 %v938_v29, %v937_v27 }
 0x2e5   : > { %v940_v15 = vrot.slane %v939_v28, 1 }
 0x2e7   : > { %v941_v5 = vadd.f32 %v940_v15, %v939_v28 }
 0x2e9   : > { %1463 = vrcp.f32 %v941_v5 }
 0x2f3   : > { %v1464_v0 = vpop.eup %1463 }
 0x3a4   : > { %v1270_v22 = vpop.f32.mrb[4].mxu1 }
 0x3a5   : > { %v1271_v9 = vpop.f32.mrb[5].mxu1 }
 0x3a6   : > { %v1272_v31 = vadd.f32 %v1271_v9, %v1270_v22  ;;  %v1273_v33 = vpop.f32.mrb[6].mxu1 }
 0x3a7   : > { %v1274_v26 = vpop.f32.mrb[7].mxu1 }
 0x3a8   : > { %v1005_v11 = vmul.f32 %v1464_v0, %v1272_v31 }
 0x3aa   : > { %1318 = vmatpush3.msk.msra.mxu1 %vm365_vm0, %v1005_v11 }
 0x3ab   : > { %1320 = vmatmul.mubr.msk.f32.vlgmr.msra.gmra.mrb[8].mxu1 %vm361_vm1, %v1006_v35 }
 0x47e   : > { %v1085_v12 = vpop.f32.mrb[8].mxu1 }
 0x47f   : > { %v1086_v37 = vadd.f32 %v1085_v12, %v1011_v32  ;;  %v1321_v38 = vpop.f32.mrb[9].mxu1 }
 0x481   : > { %1089 = vst [vmem:[%s335_s22] sm:$0xf] %v1086_v37 }
 0x482   : > { %1478 = shalt.err (!%p1475_p7)
}
 0x483   : > { %s1479_s10 = scalar_lea.hbm %s2029_s16, 64  ;;  %s1483_s14 = scalar_lea.hbm %s2090_s8, 256 }
 0x484   : > { %p1480_p9 = scmp.ne.s32.totalorder %s2029_s16, %s1479_s10  ;;  %p1484_p12 = scmp.lt.u32.totalorder %s2029_s16, %s2090_s8 }
 0x485   : > { %p1485_p13 = scmp.lt.u32.totalorder %s1483_s14, %s1479_s10  ;;  %p1487_p1 = scmp.lt.u32.totalorder %s1479_s10, %s2029_s16 }
 0x486   : > { %p1481_p10 = pnand %p1480_p9, %p1661_p3 }
 0x487   : > { %p1486_p0 = por %p1485_p13, %p1484_p12 }
 0x488   : > { %p1482_p11 = pneg %p1481_p10 }
 0x489   : > { %p1488_p2 = por %p1487_p1, %p1486_p0 }
 0x48b   : > { %p1489_p4 = pnand %p1488_p2, %p1482_p11 }
 0x48d   : > { %1492 = shalt.err (!%p1489_p4)
}
 0x48e   : > { %1323 = dma.vmem_to_hbm [thread:$0]  (%p1661_p3), %s2031_s24, 64, %s2029_s16, %s1091_s9  }
 0x48f PF: > { %p1329_p5 = scmp.ge.s32.totalorder %s1559_s12, 2  ;;  %s1118_s21 = sand.u32 1, %s1531_s27  }
 0x490   : > { %s1119_s22 = scalar_lea.sflag [#allocation3], %s1118_s21 }
 0x491   : > { %p1326_p6 = pnand %p1329_p5, %p1670_p8 }
 0x493   : > { %1526 = dma.done.wait (!%p1326_p6), %s1119_s22, 64  }
 0x494   : > { %1528 = vsyncadd (!%p1326_p6), %s1119_s22, 4294967232  ;;  %s21_s12 = sadd.s32 1, %s1559_s12   ;;  %s2104_s18 = sld [smem:[#allocation9_spill]] }
 0x495   : > { %p18_p7 = scmp.ge.s32.totalorder %s21_s12, 6   ;;  %s2105_s30 = sld [smem:[#allocation5_spill]] }
 0x496   : > { %s2106_s9 = sld [smem:[#allocation6_spill]]  ;;  %s2107_s10 = sld [smem:[#allocation7_spill]] }
 0x497   : > { %s2108_s11 = sld [smem:[#allocation8_spill]]  ;;  %s2109_s27 = smov %s1535_s28 }
 0x498   : > { %s2110_s28 = smov %s1539_s29  ;;  %20 = sbr.rel (!%p18_p7) target bundleno = 7 (0x7), region = 90 }
 0x49a   : > { %s2111_s29 = smov %s2104_s18 }
 0x49f   :  { %1124 = vsyncpa [#allocation3], 1 }
 0x4a0   :  { %1126 = vsyncpa [#allocation3 + $0x1], 1 }

</bundles_post_ra>
